<compile_context>
chip_gen: v5e
topology: v5e:2x2
jax: 0.10.0
libtpu: 0.0.40
codegen_flags: <defaults>
</compile_context>

<pallas_src>
import functools

import jax
import jax.numpy as jnp
from jax import lax
from jax.experimental import pallas as pl
from jax.experimental.pallas import tpu as pltpu


def _normlinear_fused_kernel(x_ref, w_ref, scale_ref, o_ref):
    # Full-K panels: one MXU dot per (i, j) tile, scaled and stored once.
    acc = jnp.dot(x_ref[...], w_ref[...], preferred_element_type=jnp.float32)
    o_ref[...] = (acc * scale_ref[...]).astype(o_ref.dtype)


def _normlinear_ktiled_kernel(x_ref, w_ref, scale_ref, o_ref, *scratch):
    # K-tiled fallback.  If no scratch was allocated the (f32) output block
    # itself is the resident accumulator.
    k = pl.program_id(2)
    acc_ref = scratch[0] if scratch else o_ref

    part = jnp.dot(x_ref[...], w_ref[...], preferred_element_type=jnp.float32)

    @pl.when(k == 0)
    def _():
        acc_ref[...] = part          # direct write: no zero-init + add

    @pl.when(k > 0)
    def _():
        acc_ref[...] += part

    @pl.when(k == pl.num_programs(2) - 1)
    def _():
        o_ref[...] = (acc_ref[...] * scale_ref[...]).astype(o_ref.dtype)


def _round_up(v, m):
    return ((v + m - 1) // m) * m


@functools.partial(
    jax.jit, static_argnames=("tm", "tn", "tk", "max_fused_vmem_bytes")
)
def norm_linear(x, weight, *, tm=512, tn=512, tk=1024,
                max_fused_vmem_bytes=40 * 1024 * 1024):
    """Pallas TPU NormLinear: x @ (W / max(||W||_col, 1e-12)).

    x: [..., in_dim], weight: [in_dim, out_dim] -> [..., out_dim] in x.dtype.
    """
    in_dim, out_dim = weight.shape
    leading = x.shape[:-1]
    x2d = x.reshape(-1, in_dim)
    m = x2d.shape[0]
    out_dtype = x.dtype

    # Column scale 1 / max(||w_col||, 1e-12), computed exactly once from the
    # stored weights (instead of once per (M-tile, k-step) inside the kernel).
    w32 = weight.astype(jnp.float32)
    scale = lax.rsqrt(
        jnp.maximum(jnp.sum(w32 * w32, axis=0, keepdims=True), 1e-24)
    )  # (1, out_dim) float32

    # Matmul operands in a single dtype (e.g. bf16 weights stay bf16 on the
    # MXU; an f32 W is cast down only if x itself is lower precision).
    w_mm = weight if weight.dtype == out_dtype else weight.astype(out_dtype)

    # Tile sizes: a block equal to the full dim is always legal; otherwise
    # keep blocks (8, 128)-aligned so partial edge tiles stay supported.
    tm = max(8, _round_up(tm, 8))
    tn = max(128, _round_up(tn, 128))
    tk = max(128, _round_up(tk, 128))
    tm_eff = m if m <= tm else tm
    tn_eff = out_dim if out_dim <= tn else tn

    xsz = jnp.dtype(x2d.dtype).itemsize
    wsz = jnp.dtype(w_mm.dtype).itemsize
    osz = jnp.dtype(out_dtype).itemsize
    acc_in_out = jnp.dtype(out_dtype) == jnp.dtype(jnp.float32)

    # ---------------- Mode A: fused-K panels (default) ----------------------
    fused_vmem = (
        2 * tm_eff * in_dim * xsz      # X row panel (double buffered)
        + 2 * in_dim * tn_eff * wsz    # W column panel (double buffered)
        + 2 * tm_eff * tn_eff * osz    # output tile
        + 2 * 8 * tn_eff * 4           # scale row
    )
    if fused_vmem <= max_fused_vmem_bytes:
        gm = pl.cdiv(m, tm_eff)
        gn = pl.cdiv(out_dim, tn_eff)

        # Order the grid so the operand that would otherwise be re-read on
        # every outer step is the LARGER one held resident (also decides the
        # axis split across v7x's two TensorCores).
        m_major = (gm - 1) * (in_dim * out_dim * wsz) <= \
                  (gn - 1) * (m * in_dim * xsz)
        if m_major:
            # i outer, j inner: X panel resident, W streamed (re-read gm x).
            grid = (gm, gn)
            x_map = lambda i, j: (i, 0)
            w_map = lambda i, j: (0, j)
            s_map = lambda i, j: (0, j)
            o_map = lambda i, j: (i, j)
            bytes_accessed = (m * in_dim * xsz
                              + gm * in_dim * out_dim * wsz
                              + m * out_dim * osz)
        else:
            # j outer, i inner: W panel resident, X streamed (re-read gn x).
            grid = (gn, gm)
            x_map = lambda j, i: (i, 0)
            w_map = lambda j, i: (0, j)
            s_map = lambda j, i: (0, j)
            o_map = lambda j, i: (i, j)
            bytes_accessed = (gn * m * in_dim * xsz
                              + in_dim * out_dim * wsz
                              + m * out_dim * osz)

        vmem_limit = int(min(56 * 2**20, max(32 * 2**20, fused_vmem + 8 * 2**20)))
        cost = pl.CostEstimate(
            flops=2 * m * out_dim * in_dim,
            transcendentals=0,
            bytes_accessed=int(bytes_accessed),
        )
        out2d = pl.pallas_call(
            _normlinear_fused_kernel,
            out_shape=jax.ShapeDtypeStruct((m, out_dim), out_dtype),
            grid_spec=pltpu.PrefetchScalarGridSpec(
                num_scalar_prefetch=0,
                grid=grid,
                in_specs=[
                    pl.BlockSpec((tm_eff, in_dim), x_map),
                    pl.BlockSpec((in_dim, tn_eff), w_map),
                    pl.BlockSpec((1, tn_eff), s_map),
                ],
                out_specs=pl.BlockSpec((tm_eff, tn_eff), o_map),
            ),
            compiler_params=pltpu.CompilerParams(
                dimension_semantics=("parallel", "parallel"),
                vmem_limit_bytes=vmem_limit,
            ),
            cost_estimate=cost,
        )(x2d, w_mm, scale)
        return out2d.reshape(*leading, out_dim)

    # ---------------- Mode B: k-tiled fallback (very large K) ---------------
    tk_eff = in_dim if in_dim <= tk else tk
    k_pad = _round_up(in_dim, tk_eff)
    # K must stay zero-padded: garbage in a partial K tile would contaminate
    # the accumulation of real output elements.
    x2d_p = x2d if k_pad == in_dim else jnp.pad(x2d, ((0, 0), (0, k_pad - in_dim)))
    w_p = w_mm if k_pad == in_dim else jnp.pad(w_mm, ((0, k_pad - in_dim), (0, 0)))

    grid = (pl.cdiv(m, tm_eff), pl.cdiv(out_dim, tn_eff), k_pad // tk_eff)
    scratch_shapes = [] if acc_in_out else [pltpu.VMEM((tm_eff, tn_eff), jnp.float32)]

    ktiled_vmem = (
        2 * tm_eff * tk_eff * xsz
        + 2 * tk_eff * tn_eff * wsz
        + 2 * tm_eff * tn_eff * osz
        + 2 * 8 * tn_eff * 4
        + (0 if acc_in_out else tm_eff * tn_eff * 4)
    )
    vmem_limit = int(min(56 * 2**20, max(32 * 2**20, ktiled_vmem + 8 * 2**20)))
    cost = pl.CostEstimate(
        flops=2 * m * out_dim * k_pad,
        transcendentals=0,
        bytes_accessed=int(grid[1] * m * k_pad * xsz
                           + grid[0] * k_pad * out_dim * wsz
                           + m * out_dim * osz),
    )
    out2d = pl.pallas_call(
        _normlinear_ktiled_kernel,
        out_shape=jax.ShapeDtypeStruct((m, out_dim), out_dtype),
        grid_spec=pltpu.PrefetchScalarGridSpec(
            num_scalar_prefetch=0,
            grid=grid,
            in_specs=[
                pl.BlockSpec((tm_eff, tk_eff), lambda i, j, k: (i, k)),
                pl.BlockSpec((tk_eff, tn_eff), lambda i, j, k: (k, j)),
                pl.BlockSpec((1, tn_eff), lambda i, j, k: (0, j)),
            ],
            out_specs=pl.BlockSpec((tm_eff, tn_eff), lambda i, j, k: (i, j)),
            scratch_shapes=scratch_shapes,
        ),
        compiler_params=pltpu.CompilerParams(
            dimension_semantics=("parallel", "parallel", "arbitrary"),
            vmem_limit_bytes=vmem_limit,
        ),
        cost_estimate=cost,
    )(x2d_p, w_p, scale)
    return out2d.reshape(*leading, out_dim)


def init_norm_linear_weight(key, in_dim, out_dim, dtype=jnp.float32):
    # xavier_uniform_ with gain = calculate_gain('relu') = sqrt(2).
    gain = 2.0 ** 0.5
    bound = gain * (6.0 / (in_dim + out_dim)) ** 0.5
    w = jax.random.uniform(key, (in_dim, out_dim), minval=-bound, maxval=bound)
    return w.astype(dtype)


def _ref_norm_linear(x, weight):
    wf = weight.astype(jnp.float32)
    w_n = wf / jnp.maximum(jnp.linalg.norm(wf, axis=0, keepdims=True), 1e-12)
    return x.astype(jnp.float32) @ w_n


if __name__ == "__main__":
    key = jax.random.PRNGKey(0)
    kw1, kx1, kw2, kx2, kw3, kx3 = jax.random.split(key, 6)

    # 1) Module-like usage: x is [T, B, in_dim].  Single fused tile, no padding.
    seq, batch, in_dim, out_dim = 8, 2, 32, 64
    w1 = init_norm_linear_weight(kw1, in_dim, out_dim)
    x1 = jax.random.normal(kx1, (seq, batch, in_dim), dtype=jnp.float32)
    o1 = jax.block_until_ready(norm_linear(x1, w1))
    r1 = _ref_norm_linear(x1, w1)
    assert o1.shape == (seq, batch, out_dim)
    assert jnp.allclose(o1.astype(jnp.float32), r1, atol=2e-2, rtol=2e-2)

    # 2) Fused-K mode, multi-tile grid with partial M/N edge tiles (no padding).
    m2, in2, out2 = 40, 640, 192
    w2 = init_norm_linear_weight(kw2, in2, out2)
    x2 = jax.random.normal(kx2, (m2, in2), dtype=jnp.float32)
    o2 = jax.block_until_ready(norm_linear(x2, w2, tm=32, tn=128))
    r2 = _ref_norm_linear(x2, w2)
    assert o2.shape == (m2, out2)
    assert jnp.allclose(o2.astype(jnp.float32), r2, atol=2e-2, rtol=2e-2)

    # 3) Forced k-tiled fallback: f32 output accumulated directly in o_ref,
    #    K zero-padded 640 -> 768, grid (2, 2, 3) with partial M/N edges.
    o3 = jax.block_until_ready(
        norm_linear(x2, w2, tm=32, tn=128, tk=256, max_fused_vmem_bytes=0))
    assert jnp.allclose(o3.astype(jnp.float32), r2, atol=2e-2, rtol=2e-2)

    # 4) bf16 operands: fused mode and forced k-tiled fallback (f32 scratch acc).
    m4, in4, out4 = 64, 384, 256
    w4 = init_norm_linear_weight(kw3, in4, out4, dtype=jnp.bfloat16)
    x4 = jax.random.normal(kx3, (m4, in4), dtype=jnp.float32).astype(jnp.bfloat16)
    r4 = _ref_norm_linear(x4, w4)
    o4a = jax.block_until_ready(norm_linear(x4, w4, tm=32, tn=128))
    o4b = jax.block_until_ready(
        norm_linear(x4, w4, tm=32, tn=128, tk=128, max_fused_vmem_bytes=0))
    assert jnp.allclose(o4a.astype(jnp.float32), r4, atol=5e-2, rtol=5e-2)
    assert jnp.allclose(o4b.astype(jnp.float32), r4, atol=5e-2, rtol=5e-2)

    print("KERNEL_OK")
</pallas_src>

<mosaic_0001>
module attributes {stable_mosaic.version = 11 : i64} {
  func.func @_normlinear_fused_kernel(%arg0: i32, %arg1: i32, %arg2: memref<16x32xf32, #tpu.memory_space<vmem>>, %arg3: memref<32x64xf32, #tpu.memory_space<vmem>>, %arg4: memref<1x64xf32, #tpu.memory_space<vmem>>, %arg5: memref<16x64xf32, #tpu.memory_space<vmem>>) attributes {dimension_semantics = [#tpu.dimension_semantics<parallel>, #tpu.dimension_semantics<parallel>], iteration_bounds = array<i64: 1, 1>, scalar_prefetch = 0 : i64, scratch_operands = 0 : i64, tpu.core_type = #tpu.core_type<tc>, window_params = [{transform_indices = @transform_0, window_bounds = array<i64: 16, 32>}, {transform_indices = @transform_1, window_bounds = array<i64: 32, 64>}, {transform_indices = @transform_2, window_bounds = array<i64: 1, 64>}, {transform_indices = @transform_3, window_bounds = array<i64: 16, 64>}]} {
    %c0 = arith.constant 0 : index
    %c0_0 = arith.constant 0 : index
    %0 = vector.load %arg2[%c0, %c0_0] : memref<16x32xf32, #tpu.memory_space<vmem>>, vector<16x32xf32>
    %c0_1 = arith.constant 0 : index
    %c0_2 = arith.constant 0 : index
    %1 = vector.load %arg3[%c0_1, %c0_2] : memref<32x64xf32, #tpu.memory_space<vmem>>, vector<32x64xf32>
    %cst = arith.constant dense<0.000000e+00> : vector<16x64xf32>
    %2 = tpu.matmul %0, %1, %cst {dimension_numbers = #tpu.dot_dimension_numbers<[1], [0], [0], [1], [0, 0, 1, 1], [], []>} : vector<16x32xf32>, vector<32x64xf32>, vector<16x64xf32> -> vector<16x64xf32>
    %c0_3 = arith.constant 0 : index
    %c0_4 = arith.constant 0 : index
    %3 = vector.load %arg4[%c0_3, %c0_4] : memref<1x64xf32, #tpu.memory_space<vmem>>, vector<1x64xf32>
    %4 = vector.broadcast %3 : vector<1x64xf32> to vector<16x64xf32>
    %5 = arith.mulf %2, %4 : vector<16x64xf32>
    %c0_5 = arith.constant 0 : index
    %c0_6 = arith.constant 0 : index
    %6 = vector.load %arg5[%c0_5, %c0_6] : memref<16x64xf32, #tpu.memory_space<vmem>>, vector<16x64xf32>
    tpu.vector_store %arg5[%c0_5, %c0_6], %5 {strides = array<i32>} : memref<16x64xf32, #tpu.memory_space<vmem>>, vector<16x64xf32>,
    return
  }
  func.func @transform_0(%arg0: i32, %arg1: i32) -> (i32, i32) {
    %c0_i32 = arith.constant 0 : i32
    %c0_i32_0 = arith.constant 0 : i32
    return %arg0, %c0_i32 : i32, i32
  }
  func.func @transform_1(%arg0: i32, %arg1: i32) -> (i32, i32) {
    %c0_i32 = arith.constant 0 : i32
    %c0_i32_0 = arith.constant 0 : i32
    return %c0_i32, %arg1 : i32, i32
  }
  func.func @transform_2(%arg0: i32, %arg1: i32) -> (i32, i32) {
    %c0_i32 = arith.constant 0 : i32
    %c0_i32_0 = arith.constant 0 : i32
    return %c0_i32, %arg1 : i32, i32
  }
  func.func @transform_3(%arg0: i32, %arg1: i32) -> (i32, i32) {
    %c0_i32 = arith.constant 0 : i32
    return %arg0, %arg1 : i32, i32
  }
}

</mosaic_0001>

<bundles_post_ra>
// kernel: norm_linear.1
= control target key start
LH: loop header
LB: loop body
LE: loop exit
PB: predicated region body
PF: predicated region fallthrough
CT: control target
= control target key end

     0   :  { %8 = vsyncpa [#allocation3], 0  ;;  %s209_s0 = inlined_call_operand.hbm [shape: f32[16,32], index: 0, kind: input, shape index: {}]   ;;  %s210_s1 = inlined_call_operand.vmem [shape: f32[32,64], index: 1, kind: input, shape index: {}]   ;;  %s211_s2 = inlined_call_operand.vmem [shape: f32[1,64], index: 2, kind: input, shape index: {}]   ;;  %s212_s3 = inlined_call_operand.hbm [shape: f32[16,64], index: 3, kind: output, shape index: {}]  }
   0x1   :  { %9 = vsyncpa [#allocation4], 0  ;;  %s14_s14 = sshll.u32 %s209_s0, 4  ;;  %s158_s15 = smov [#allocation2]   ;;  %s15_s14 = int_to_ptr.hbm [resolvable:$true] %s14_s14 }
   0x2   :  { %s16_s16 = sshll.u32 %s158_s15, 4  ;;  %s159_s17 = smov 128   ;;  %s17_s16 = int_to_ptr.vmem [resolvable:$true] %s16_s16 }
   0x3   :  { %s160_s18 = smov 8  }
   0x4   :  { %22 = dma.hbm_to_vmem [thread:$0]  %s15_s14, 256, %s17_s16, [#allocation3], %s159_s17, %s159_s17, %s160_s18  }
   0x5   :  { %154 = dma.done.wait [#allocation3], 256  }
   0x6   :  { %155 = vsyncadd [#allocation3], 4294967040  ;;  %v36_v0 = vld [vmem:[%s210_s1 + $0x18] sm:$0xff]  ;;  %v35_v1 = vld [vmem:[%s210_s1 + $0x10] sm:$0xff]  ;;  %vm37_vm0 = vcmask 261120   ;;  %s161_s28 = smov [#allocation5]  }
   0x7   :  { %56 = vmatpush.msra.mxu0 %v36_v0  ;;  %97 = vmatpush.msra.mxu1 %v36_v0  ;;  %v34_v2 = vld [vmem:[%s210_s1 + $0x8] sm:$0xff]  ;;  %v33_v3 = vld [vmem:[%s210_s1] sm:$0xff]  ;;  %s80_s29 = sshll.u32 %s161_s28, 4  ;;  %s82_s5 = sshll.u32 %s212_s3, 4  ;;  %vm73_vm1 = vcmask 523264   ;;  %s81_s29 = int_to_ptr.vmem [resolvable:$true] %s80_s29  ;;  %s83_s5 = int_to_ptr.hbm [resolvable:$true] %s82_s5 }
   0x8   :  { %v31_v4 = vld [vmem:[#allocation2] sm:$0xff]  ;;  %v32_v5 = vld [vmem:[#allocation2 + $0x8] sm:$0xff] }
   0x9   :  { %57 = vmatpush.msra.mxu0 %v35_v1  ;;  %98 = vmatpush.msra.mxu1 %v35_v1  ;;  %v105_v6 = vld [vmem:[%s211_s2] ss:$0 sm:$0xff] }
   0xb   :  { %58 = vmatpush.msra.mxu0 %v34_v2  ;;  %99 = vmatpush.msra.mxu1 %v34_v2 }
   0xd   :  { %59 = vmatpush.msra.mxu0 %v33_v3  ;;  %100 = vmatpush.msra.mxu1 %v33_v3 }
   0xe   :  { %95 = vmatmul.msk.f32.vlgmr.msra.gmra.mxu0 %vm37_vm0, %v31_v4  ;;  %96 = vmatmul.msk.f32.vlgmr.msra.gmra.mxu1 %vm37_vm0, %v32_v5 }
  0x8b   :  { %v61_v7 = vpop.f32.mrf.mxu0  ;;  %v64_v8 = vpop.f32.mrf.mxu1 }
  0x8c   :  { %v71_v9 = vmul.f32 %v105_v6, %v61_v7  ;;  %v72_v10 = vmul.f32 %v105_v6, %v64_v8 }
  0x8e   :  { %74 = vst.msk [vmem:[#allocation5] sm:$0xff] %vm73_vm1, %v71_v9 }
  0x8f   :  { %75 = vst.msk [vmem:[#allocation5 + $0x8] sm:$0xff] %vm73_vm1, %v72_v10 }
  0x90   :  { %88 = dma.vmem_to_hbm [thread:$0]  %s81_s29, 256, %s83_s5, [#allocation4], %s159_s17, %s159_s17, %s160_s18  }
  0x91   :  { %156 = dma.done.wait [#allocation4], 256  }
  0x92   :  { %157 = vsyncadd [#allocation4], 4294967040 }
  0x93   :  { %93 = vsyncpa [#allocation3], 1 }
  0x94   :  { %94 = vsyncpa [#allocation4], 1 }

</bundles_post_ra>
